<compile_context>
chip_gen: v6e
topology: v6e:2x2x1
jax: 0.10.0
libtpu: 0.0.40
codegen_flags: <defaults>
</compile_context>

<pallas_src>
import functools

import jax
import jax.numpy as jnp
from jax import lax
from jax.experimental import pallas as pl
from jax.experimental.pallas import tpu as pltpu

_EPS = 1e-5
_NEG_SLOPE = 0.01
_LANE = 128


def _round_up(a, m):
    return ((a + m - 1) // m) * m


def _conv_bn_lrelu_kernel(w_ref, xf_ref, mask_ref, gb_ref, o_ref, *,
                          K, out_cols, inv_n):
    # w_ref    : (K, C_TILE, C_in_pad)  per-tap conv weights (bias cancels in BN)
    # xf_ref   : (C_in_pad, XF_COLS)    per-sample-padded input slab; column
    #                                   n*Lp + pad + l holds x[n, :, l], rest 0
    # mask_ref : (1, OUT_COLS)          1.0 on valid (n, l < L) lanes, else 0.0
    # gb_ref   : (C_TILE, 2)            column 0 = gamma, column 1 = beta
    # o_ref    : (C_TILE, OUT_COLS)     fused output block (lane-dense, x128)

    # --- Conv1d ('same', stride 1) as K accumulated MXU matmuls over
    #     lane-shifted slices of the padded slab (in-VMEM im2col) ---
    y = jnp.dot(w_ref[0], xf_ref[:, 0:out_cols],
                preferred_element_type=jnp.float32)
    for k in range(1, K):                       # K is small & static -> unrolled
        y = y + jnp.dot(w_ref[k], xf_ref[:, k:k + out_cols],
                        preferred_element_type=jnp.float32)

    # --- BatchNorm1d training-mode batch stats (biased var) over valid lanes.
    #     One mask multiply zeroes the intra-segment junk lanes; the lane tail
    #     past N*Lp already reads only zero columns so needs no mask. ---
    yv = y * mask_ref[...]
    mean = jnp.sum(yv, axis=1, keepdims=True) * inv_n
    ex2 = jnp.sum(yv * yv, axis=1, keepdims=True) * inv_n
    var = jnp.maximum(ex2 - mean * mean, 0.0)   # guard f32 cancellation

    # Fold BN affine into one per-channel scale/shift; rsqrt goes to the EUP.
    scale = gb_ref[:, 0:1] * lax.rsqrt(var + _EPS)
    shift = gb_ref[:, 1:2] - mean * scale
    z = y * scale + shift

    # --- LeakyReLU: slope < 1  =>  max(z, slope*z) ---
    o_ref[...] = jnp.maximum(z, _NEG_SLOPE * z).astype(o_ref.dtype)


def con_norm_relu(x, w, b, gamma, beta):
    """x: (N, C_in, L) f32, w: (C_out, C_in, K), b/gamma/beta: (C_out,)."""
    del b  # Conv bias cancels exactly through training-mode BN mean subtraction.
    N, C_in, L = x.shape
    C_out, _, K = w.shape
    pad = (K - 1) // 2                     # 'same' padding for odd K
    Lp = L + 2 * pad                       # per-sample padded segment length
    nlp = N * Lp
    nl_valid = N * L

    out_cols = _round_up(nlp, _LANE)                   # lane-dense output width
    xf_cols = _round_up(out_cols + (K - 1), _LANE)     # slack for tap-K slices
    C_in_pad = _round_up(C_in, 8)

    # Channel tile: multiples of 8 sublanes; >=2 grid steps when C_out >= 16
    # so the "parallel" axis actually shards across both TCs on v7x.
    if C_out <= 8:
        c_tile = 8
    else:
        c_tile = min(128, _round_up(pl.cdiv(C_out, 2), 8))
    C_out_pad = _round_up(C_out, c_tile)
    grid = (C_out_pad // c_tile,)

    # --- Input slab: per-sample 'same' padding, contiguous on the lane axis.
    #     Column n*Lp + pad + l holds x[n, :, l]; everything else is zero.
    #     ~1x input HBM traffic (no 5x im2col materialization). ---
    xp = jnp.pad(x, ((0, 0), (0, 0), (pad, pad)))              # (N, C_in, Lp)
    xf = jnp.transpose(xp, (1, 0, 2)).reshape(C_in, nlp)       # (C_in, N*Lp)
    xf = jnp.pad(xf, ((0, C_in_pad - C_in), (0, xf_cols - nlp)))

    # Per-tap weights stacked on the leading axis; zero-pad channels so dead
    # rows produce exactly-zero (finite) outputs.
    w3 = jnp.pad(jnp.transpose(w, (2, 0, 1)),
                 ((0, 0), (0, C_out_pad - C_out), (0, C_in_pad - C_in)))
    gb = jnp.pad(jnp.stack([gamma, beta], axis=1),
                 ((0, C_out_pad - C_out), (0, 0)))              # (C_out_pad, 2)

    # Valid-lane mask: 1.0 where column is a real (n, l < L) output position.
    j = jnp.arange(out_cols)
    mask = (((j % Lp) < L) & (j < nlp)).astype(jnp.float32).reshape(1, out_cols)

    # VMEM budget per generation (leave headroom for Mosaic internal scratch).
    try:
        vmem_cap = pltpu.get_tpu_info().vmem_capacity_bytes
    except Exception:
        vmem_cap = 64 * 1024 * 1024
    vmem_limit = min((vmem_cap * 3) // 4, 100 * 1024 * 1024)

    # TODO(synk): lane-axis (N*L) grid tiling with two-pass BN for large N*L.
    approx_bytes = 4 * (2 * C_in_pad * xf_cols        # double-buffered slab
                        + 2 * c_tile * out_cols       # double-buffered output
                        + 4 * c_tile * out_cols)      # y/yv/z temporaries
    if approx_bytes > vmem_limit:
        raise NotImplementedError(
            "N*L too large for the single-slab kernel; needs lane-axis tiling.")

    out2d = pl.pallas_call(
        functools.partial(_conv_bn_lrelu_kernel,
                          K=K, out_cols=out_cols, inv_n=1.0 / nl_valid),
        out_shape=jax.ShapeDtypeStruct((C_out_pad, out_cols), x.dtype),
        grid=grid,
        in_specs=[
            pl.BlockSpec((K, c_tile, C_in_pad), lambda i: (0, i, 0)),  # weights
            pl.BlockSpec((C_in_pad, xf_cols), lambda i: (0, 0)),       # input slab
            pl.BlockSpec((1, out_cols), lambda i: (0, 0)),             # lane mask
            pl.BlockSpec((c_tile, 2), lambda i: (i, 0)),               # gamma|beta
        ],
        out_specs=pl.BlockSpec((c_tile, out_cols), lambda i: (i, 0)),
        compiler_params=pltpu.CompilerParams(
            dimension_semantics=("parallel",),
            vmem_limit_bytes=int(vmem_limit),
        ),
    )(w3, xf, mask, gb)

    # Back to the PyTorch (N, C_out, L) layout; drop channel/lane padding.
    # TODO(synk): consumers that accept channel-major (C_out, N, L) could take
    # out2d directly and skip this extra HBM pass.
    out = out2d[:C_out, :nlp].reshape(C_out, N, Lp)[:, :, :L]
    return jnp.transpose(out, (1, 0, 2))


def _reference(x, w, b, gamma, beta):
    """Pure-JAX reference matching PyTorch forward semantics (with conv bias)."""
    pad = (w.shape[-1] - 1) // 2
    y = lax.conv_general_dilated(
        x, w, window_strides=(1,), padding=[(pad, pad)],
        dimension_numbers=("NCH", "OIH", "NCH"),
    ) + b[None, :, None]
    mean = y.mean(axis=(0, 2), keepdims=True)
    var = jnp.square(y - mean).mean(axis=(0, 2), keepdims=True)
    yhat = (y - mean) / jnp.sqrt(var + _EPS)
    yhat = yhat * gamma[None, :, None] + beta[None, :, None]
    return jnp.where(yhat >= 0, yhat, _NEG_SLOPE * yhat)


if __name__ == "__main__":
    # Small shapes consistent with the module: batch=2, in_channel=4, out_channel=8, L=16
    N, C_in, C_out, L, K = 2, 4, 8, 16, 5

    key = jax.random.PRNGKey(0)
    kx, kw, kb = jax.random.split(key, 3)

    x = jax.random.normal(kx, (N, C_in, L), dtype=jnp.float32)

    # Deterministic Conv1d-style init (uniform +-1/sqrt(fan_in)); BN: gamma=1, beta=0.
    bound = 1.0 / (C_in * K) ** 0.5
    w = jax.random.uniform(kw, (C_out, C_in, K), jnp.float32, -bound, bound)
    b = jax.random.uniform(kb, (C_out,), jnp.float32, -bound, bound)
    gamma = jnp.ones((C_out,), jnp.float32)
    beta = jnp.zeros((C_out,), jnp.float32)

    fn = jax.jit(con_norm_relu)
    out = jax.block_until_ready(fn(x, w, b, gamma, beta))
    ref = _reference(x, w, b, gamma, beta)

    assert out.shape == (N, C_out, L)
    assert jnp.allclose(out, ref, rtol=1e-4, atol=1e-5), "mismatch vs reference"
    print("KERNEL_OK")
</pallas_src>

<mosaic_0001>
module attributes {stable_mosaic.version = 11 : i64} {
  func.func @_conv_bn_lrelu_kernel(%arg0: i32, %arg1: memref<5x8x8xf32, #tpu.memory_space<vmem>>, %arg2: memref<8x256xf32, #tpu.memory_space<vmem>>, %arg3: memref<1x128xf32, #tpu.memory_space<vmem>>, %arg4: memref<8x2xf32, #tpu.memory_space<vmem>>, %arg5: memref<8x128xf32, #tpu.memory_space<vmem>>) attributes {dimension_semantics = [#tpu.dimension_semantics<parallel>], iteration_bounds = array<i64: 1>, scalar_prefetch = 0 : i64, scratch_operands = 0 : i64, tpu.core_type = #tpu.core_type<tc>, window_params = [{transform_indices = @transform_0, window_bounds = array<i64: 5, 8, 8>}, {pipeline_mode = #tpu.pipeline_mode<synchronous>, transform_indices = @transform_1, window_bounds = array<i64: 8, 256>}, {pipeline_mode = #tpu.pipeline_mode<synchronous>, transform_indices = @transform_2, window_bounds = array<i64: 1, 128>}, {transform_indices = @transform_3, window_bounds = array<i64: 8, 2>}, {transform_indices = @transform_4, window_bounds = array<i64: 8, 128>}]} {
    %c0 = arith.constant 0 : index
    %c0_0 = arith.constant 0 : index
    %c0_1 = arith.constant 0 : index
    %0 = vector.load %arg1[%c0, %c0_0, %c0_1] : memref<5x8x8xf32, #tpu.memory_space<vmem>>, vector<1x8x8xf32>
    %1 = vector.shape_cast %0 : vector<1x8x8xf32> to vector<8x8xf32>
    %c0_2 = arith.constant 0 : index
    %c0_3 = arith.constant 0 : index
    %2 = vector.load %arg2[%c0_2, %c0_3] : memref<8x256xf32, #tpu.memory_space<vmem>>, vector<8x128xf32>
    %cst = arith.constant dense<0.000000e+00> : vector<8x128xf32>
    %3 = tpu.matmul %1, %2, %cst {dimension_numbers = #tpu.dot_dimension_numbers<[1], [0], [0], [1], [0, 0, 1, 1], [], []>} : vector<8x8xf32>, vector<8x128xf32>, vector<8x128xf32> -> vector<8x128xf32>
    %c1 = arith.constant 1 : index
    %c0_4 = arith.constant 0 : index
    %c0_5 = arith.constant 0 : index
    %4 = vector.load %arg1[%c1, %c0_4, %c0_5] : memref<5x8x8xf32, #tpu.memory_space<vmem>>, vector<1x8x8xf32>
    %5 = vector.shape_cast %4 : vector<1x8x8xf32> to vector<8x8xf32>
    %c0_6 = arith.constant 0 : index
    %c1_7 = arith.constant 1 : index
    %6 = vector.load %arg2[%c0_6, %c1_7] : memref<8x256xf32, #tpu.memory_space<vmem>>, vector<8x128xf32>
    %cst_8 = arith.constant dense<0.000000e+00> : vector<8x128xf32>
    %7 = tpu.matmul %5, %6, %cst_8 {dimension_numbers = #tpu.dot_dimension_numbers<[1], [0], [0], [1], [0, 0, 1, 1], [], []>} : vector<8x8xf32>, vector<8x128xf32>, vector<8x128xf32> -> vector<8x128xf32>
    %8 = arith.addf %3, %7 : vector<8x128xf32>
    %c2 = arith.constant 2 : index
    %c0_9 = arith.constant 0 : index
    %c0_10 = arith.constant 0 : index
    %9 = vector.load %arg1[%c2, %c0_9, %c0_10] : memref<5x8x8xf32, #tpu.memory_space<vmem>>, vector<1x8x8xf32>
    %10 = vector.shape_cast %9 : vector<1x8x8xf32> to vector<8x8xf32>
    %c0_11 = arith.constant 0 : index
    %c2_12 = arith.constant 2 : index
    %11 = vector.load %arg2[%c0_11, %c2_12] : memref<8x256xf32, #tpu.memory_space<vmem>>, vector<8x128xf32>
    %cst_13 = arith.constant dense<0.000000e+00> : vector<8x128xf32>
    %12 = tpu.matmul %10, %11, %cst_13 {dimension_numbers = #tpu.dot_dimension_numbers<[1], [0], [0], [1], [0, 0, 1, 1], [], []>} : vector<8x8xf32>, vector<8x128xf32>, vector<8x128xf32> -> vector<8x128xf32>
    %13 = arith.addf %8, %12 : vector<8x128xf32>
    %c3 = arith.constant 3 : index
    %c0_14 = arith.constant 0 : index
    %c0_15 = arith.constant 0 : index
    %14 = vector.load %arg1[%c3, %c0_14, %c0_15] : memref<5x8x8xf32, #tpu.memory_space<vmem>>, vector<1x8x8xf32>
    %15 = vector.shape_cast %14 : vector<1x8x8xf32> to vector<8x8xf32>
    %c0_16 = arith.constant 0 : index
    %c3_17 = arith.constant 3 : index
    %16 = vector.load %arg2[%c0_16, %c3_17] : memref<8x256xf32, #tpu.memory_space<vmem>>, vector<8x128xf32>
    %cst_18 = arith.constant dense<0.000000e+00> : vector<8x128xf32>
    %17 = tpu.matmul %15, %16, %cst_18 {dimension_numbers = #tpu.dot_dimension_numbers<[1], [0], [0], [1], [0, 0, 1, 1], [], []>} : vector<8x8xf32>, vector<8x128xf32>, vector<8x128xf32> -> vector<8x128xf32>
    %18 = arith.addf %13, %17 : vector<8x128xf32>
    %c4 = arith.constant 4 : index
    %c0_19 = arith.constant 0 : index
    %c0_20 = arith.constant 0 : index
    %19 = vector.load %arg1[%c4, %c0_19, %c0_20] : memref<5x8x8xf32, #tpu.memory_space<vmem>>, vector<1x8x8xf32>
    %20 = vector.shape_cast %19 : vector<1x8x8xf32> to vector<8x8xf32>
    %c0_21 = arith.constant 0 : index
    %c4_22 = arith.constant 4 : index
    %21 = vector.load %arg2[%c0_21, %c4_22] : memref<8x256xf32, #tpu.memory_space<vmem>>, vector<8x128xf32>
    %cst_23 = arith.constant dense<0.000000e+00> : vector<8x128xf32>
    %22 = tpu.matmul %20, %21, %cst_23 {dimension_numbers = #tpu.dot_dimension_numbers<[1], [0], [0], [1], [0, 0, 1, 1], [], []>} : vector<8x8xf32>, vector<8x128xf32>, vector<8x128xf32> -> vector<8x128xf32>
    %23 = arith.addf %18, %22 : vector<8x128xf32>
    %c0_24 = arith.constant 0 : index
    %c0_25 = arith.constant 0 : index
    %24 = vector.load %arg3[%c0_24, %c0_25] : memref<1x128xf32, #tpu.memory_space<vmem>>, vector<1x128xf32>
    %25 = vector.broadcast %24 : vector<1x128xf32> to vector<8x128xf32>
    %26 = arith.mulf %23, %25 : vector<8x128xf32>
    %cst_26 = arith.constant dense<0.000000e+00> : vector<8xf32>
    %27 = vector.multi_reduction <add>, %26, %cst_26 [1] : vector<8x128xf32> to vector<8xf32>
    %28 = vector.shape_cast %27 : vector<8xf32> to vector<8x1xf32>
    %cst_27 = arith.constant 3.125000e-02 : f32
    %29 = vector.broadcast %cst_27 : f32 to vector<8x1xf32>
    %30 = arith.mulf %28, %29 : vector<8x1xf32>
    %31 = arith.mulf %26, %26 : vector<8x128xf32>
    %cst_28 = arith.constant dense<0.000000e+00> : vector<8xf32>
    %32 = vector.multi_reduction <add>, %31, %cst_28 [1] : vector<8x128xf32> to vector<8xf32>
    %33 = vector.shape_cast %32 : vector<8xf32> to vector<8x1xf32>
    %cst_29 = arith.constant 3.125000e-02 : f32
    %34 = vector.broadcast %cst_29 : f32 to vector<8x1xf32>
    %35 = arith.mulf %33, %34 : vector<8x1xf32>
    %36 = arith.mulf %30, %30 : vector<8x1xf32>
    %37 = arith.subf %35, %36 : vector<8x1xf32>
    %cst_30 = arith.constant 0.000000e+00 : f32
    %38 = vector.broadcast %cst_30 : f32 to vector<8x1xf32>
    %39 = arith.maximumf %37, %38 : vector<8x1xf32>
    %c0_31 = arith.constant 0 : index
    %c0_32 = arith.constant 0 : index
    %40 = vector.load %arg4[%c0_31, %c0_32] : memref<8x2xf32, #tpu.memory_space<vmem>>, vector<8x1xf32>
    %cst_33 = arith.constant 9.99999974E-6 : f32
    %41 = vector.broadcast %cst_33 : f32 to vector<8x1xf32>
    %42 = arith.addf %39, %41 : vector<8x1xf32>
    %43 = math.rsqrt %42 : vector<8x1xf32>
    %44 = arith.mulf %40, %43 : vector<8x1xf32>
    %c0_34 = arith.constant 0 : index
    %c1_35 = arith.constant 1 : index
    %45 = vector.load %arg4[%c0_34, %c1_35] : memref<8x2xf32, #tpu.memory_space<vmem>>, vector<8x1xf32>
    %46 = arith.mulf %30, %44 : vector<8x1xf32>
    %47 = arith.subf %45, %46 : vector<8x1xf32>
    %48 = vector.broadcast %44 : vector<8x1xf32> to vector<8x128xf32>
    %49 = arith.mulf %23, %48 : vector<8x128xf32>
    %50 = vector.broadcast %47 : vector<8x1xf32> to vector<8x128xf32>
    %51 = arith.addf %49, %50 : vector<8x128xf32>
    %cst_36 = arith.constant 0.00999999977 : f32
    %52 = vector.broadcast %cst_36 : f32 to vector<8x128xf32>
    %53 = arith.mulf %52, %51 : vector<8x128xf32>
    %54 = arith.maximumf %51, %53 : vector<8x128xf32>
    %c0_37 = arith.constant 0 : index
    %c0_38 = arith.constant 0 : index
    %55 = vector.load %arg5[%c0_37, %c0_38] : memref<8x128xf32, #tpu.memory_space<vmem>>, vector<8x128xf32>
    tpu.vector_store %arg5[%c0_37, %c0_38], %54 {strides = array<i32>} : memref<8x128xf32, #tpu.memory_space<vmem>>, vector<8x128xf32>,
    return
  }
  func.func @transform_0(%arg0: i32) -> (i32, i32, i32) {
    %c0_i32 = arith.constant 0 : i32
    %c0_i32_0 = arith.constant 0 : i32
    %c0_i32_1 = arith.constant 0 : i32
    return %c0_i32, %arg0, %c0_i32_0 : i32, i32, i32
  }
  func.func @transform_1(%arg0: i32) -> (i32, i32) {
    %c0_i32 = arith.constant 0 : i32
    %c0_i32_0 = arith.constant 0 : i32
    %c0_i32_1 = arith.constant 0 : i32
    return %c0_i32, %c0_i32_0 : i32, i32
  }
  func.func @transform_2(%arg0: i32) -> (i32, i32) {
    %c0_i32 = arith.constant 0 : i32
    %c0_i32_0 = arith.constant 0 : i32
    %c0_i32_1 = arith.constant 0 : i32
    return %c0_i32, %c0_i32_0 : i32, i32
  }
  func.func @transform_3(%arg0: i32) -> (i32, i32) {
    %c0_i32 = arith.constant 0 : i32
    %c0_i32_0 = arith.constant 0 : i32
    return %arg0, %c0_i32 : i32, i32
  }
  func.func @transform_4(%arg0: i32) -> (i32, i32) {
    %c0_i32 = arith.constant 0 : i32
    %c0_i32_0 = arith.constant 0 : i32
    return %arg0, %c0_i32 : i32, i32
  }
}

</mosaic_0001>

<bundles_post_ra>
// kernel: con_norm_relu.1
= control target key start
LH: loop header
LB: loop body
LE: loop exit
PB: predicated region body
PF: predicated region fallthrough
CT: control target
= control target key end

     0   :  { %v533_v1 = vmov 0.0   ;;  %vm534_vm0 = vmmov 0   ;;  %s535_s17 = smov 126   ;;  %s536_s18 = smov 127   ;;  %vm32_vm1 = vcmask 64512   ;;  %vm29_vm2 = vcmask 1039360   ;;  %s607_s1 = inlined_call_operand.vmem [shape: f32[8,256], index: 1, kind: input, shape index: {}]   ;;  %s608_s0 = inlined_call_operand.vmem [shape: f32[5,8,8], index: 0, kind: input, shape index: {}]   ;;  %s609_s2 = inlined_call_operand.vmem [shape: f32[1,128], index: 2, kind: input, shape index: {}]   ;;  %s610_s3 = inlined_call_operand.vmem [shape: f32[8,2], index: 3, kind: input, shape index: {}]   ;;  %s611_s4 = inlined_call_operand.vmem [shape: f32[8,128], index: 4, kind: output, shape index: {}]  }
   0x1   :  { %v21_v0 = vld [vmem:[%s607_s1] sm:$0xff]  ;;  %495 = vmatprep.subr.mxu0 %v533_v1  ;;  %497 = vmatprep.mubr.msk.f32.mxu0 %vm534_vm0, %v533_v1  ;;  %v22_v3 = vld [vmem:[%s607_s1 + $0x8] sm:$0xff]  ;;  %s537_s23 = smov 125   ;;  %s538_s24 = smov 124   ;;  %vm185_vm3 = vcmask 1031168   ;;  %vm268_vm4 = vcmask 1022976  }
   0x2   :  { %181 = vrot.lane.b32.xlu1 %v21_v0, %s535_s17  ;;  %25 = vrot.lane.b32.xlu0 %v21_v0, %s536_s18  ;;  %v17_v2 = vld [vmem:[%s608_s0] sm:$0xff]  ;;  %v475_v8 = vld [vmem:[%s608_s0 + $0x8] sm:$0xff]  ;;  %vm351_vm5 = vcmask 1014784   ;;  %v539_v37 = vmov 0   ;;  %v540_v46 = vmov 1   ;;  %s541_s8 = smov 1  }
   0x3   :  { %500 = vmatprep.subr.mxu1 %v533_v1  ;;  %502 = vmatprep.mubr.msk.f32.mxu1 %vm534_vm0, %v533_v1  ;;  %v478_v13 = vld [vmem:[%s608_s0 + $0x10] sm:$0xff]  ;;  %v480_v14 = vld [vmem:[%s608_s0 + $0x18] sm:$0xff]  ;;  %v482_v18 = vld [vmem:[%s608_s0 + $0x20] sm:$0xff] }
   0x4   :  { %501 = vmatpush3.msra.mxu1 %v21_v0  ;;  %v484_v32 = vld [vmem:[%s609_s2] ss:$0 sm:$0xff]  ;;  %529 = vset.pattern.permute.xlu1 %v539_v37 }
   0x5   :  { %503 = vmatmul.mubr.msk.f32.vlgmr.msra.gmra.mxu1 %vm32_vm1, %v17_v2  ;;  %510 = vmatprep.subr.mxu1 %v533_v1  ;;  %v446_v47 = vld [vmem:[%s610_s3] sm:$0xff] }
   0x6   :  { %183 = vrot.lane.b32.xlu1 %v22_v3, %s535_s17  ;;  %27 = vrot.lane.b32.xlu0 %v22_v3, %s536_s18 }
   0x7   :  { %512 = vmatprep.mubr.msk.f32.mxu1 %vm534_vm0, %v533_v1  ;;  %530 = vset.pattern.permute.xlu0 %v540_v46 }
   0xa   :  { %266 = vrot.lane.b32.xlu1 %v22_v3, %s537_s23  ;;  %264 = vrot.lane.b32.xlu0 %v21_v0, %s537_s23 }
   0xe   :  { %349 = vrot.lane.b32.xlu1 %v22_v3, %s538_s24  ;;  %347 = vrot.lane.b32.xlu0 %v21_v0, %s538_s24 }
  0x74   :  { %v182_v4 = vpop.permute.xlu1 %181  ;;  %v26_v5 = vpop.permute.xlu0 %25 }
  0x78   :  { %v184_v6 = vpop.permute.xlu1 %183  ;;  %v28_v7 = vpop.permute.xlu0 %27 }
  0x79   :  { %v30_v9 = vsel %vm29_vm2, %v26_v5, %v28_v7  ;;  %v186_v10 = vsel %vm185_vm3, %v182_v4, %v184_v6 }
  0x7a   :  { %496 = vmatpush3.msra.mxu0 %v30_v9 }
  0x7b   :  { %498 = vmatmul.mubr.msk.f32.vlgmr.msra.gmra.mxu0 %vm32_vm1, %v475_v8  ;;  %505 = vmatprep.subr.mxu0 %v533_v1 }
  0x7c   :  { %v267_v11 = vpop.permute.xlu1 %266  ;;  %v265_v12 = vpop.permute.xlu0 %264  ;;  %506 = vmatpush3.msra.mxu0 %v186_v10  ;;  %507 = vmatprep.mubr.msk.f32.mxu0 %vm534_vm0, %v533_v1 }
  0x7d   :  { %v269_v15 = vsel %vm268_vm4, %v265_v12, %v267_v11  ;;  %515 = vmatprep.subr.mxu0 %v533_v1 }
  0x7e   :  { %511 = vmatpush3.msra.mxu1 %v269_v15 }
  0x7f   :  { %508 = vmatmul.mubr.msk.f32.vlgmr.msra.gmra.mxu0 %vm32_vm1, %v478_v13  ;;  %513 = vmatmul.mubr.msk.f32.vlgmr.msra.gmra.mxu1 %vm32_vm1, %v480_v14 }
  0x80   :  { %v350_v16 = vpop.permute.xlu1 %349  ;;  %v348_v17 = vpop.permute.xlu0 %347  ;;  %517 = vmatprep.mubr.msk.f32.mxu0 %vm534_vm0, %v533_v1 }
  0x81   :  { %v352_v19 = vsel %vm351_vm5, %v348_v17, %v350_v16 }
  0x82   :  { %516 = vmatpush3.msra.mxu0 %v352_v19 }
  0x83   :  { %518 = vmatmul.mubr.msk.f32.vlgmr.msra.gmra.mxu0 %vm32_vm1, %v482_v18 }
  0xc5   :  { %v175_v20 = vpop.f32.mrf.mxu1 }
  0xc7   :  { %v504_v21 = vpop.f32.mrf.mxu1 }
 0x13b   :  { %v102_v22 = vpop.f32.mrf.mxu0 }
 0x13c   :  { %v176_v24 = vadd.f32 %v175_v20, %v102_v22 }
 0x13d   :  { %v499_v23 = vpop.f32.mrf.mxu0 }
 0x13f   :  { %v257_v25 = vpop.f32.mrf.mxu0  ;;  %v340_v26 = vpop.f32.mrf.mxu1 }
 0x140   :  { %v261_v27 = vadd.f32 %v257_v25, %v176_v24 }
 0x141   :  { %v509_v28 = vpop.f32.mrf.mxu0  ;;  %v514_v29 = vpop.f32.mrf.mxu1 }
 0x142   :  { %v344_v30 = vadd.f32 %v340_v26, %v261_v27 }
 0x143   :  { %v423_v31 = vpop.f32.mrf.mxu0 }
 0x144   :  { %v427_v33 = vadd.f32 %v423_v31, %v344_v30 }
 0x145   :  { %v519_v34 = vpop.f32.mrf.mxu0 }
 0x146   :  { %v435_v35 = vmul.f32 %v484_v32, %v427_v33 }
 0x148   :  { %436 = vadd.xlane.f32.xlu0 %v435_v35  ;;  %v439_v36 = vmul.f32 %v435_v35, %v435_v35 }
 0x14a   :  { %440 = vadd.xlane.f32.xlu1 %v439_v36 }
 0x1d1   :  { %v437_v38 = vpop.xlane.xlu0 %436 }
 0x1d2   :  { %v438_v39 = vmul.f32 0.03125, %v437_v38 }
 0x1d3   :  { %v441_v40 = vpop.xlane.xlu1 %440 }
 0x1d4   :  { %v443_v41 = vmul.f32 %v438_v39, %v438_v39  ;;  %v442_v42 = vmul.f32 0.03125, %v441_v40 }
 0x1d6   :  { %v444_v43 = vsub.f32 %v442_v42, %v443_v41 }
 0x1d8   :  { %v445_v44 = vmax.f32 %v444_v43, 0.0 }
 0x1da   :  { %v447_v45 = vadd.f32 1e-05, %v445_v44 }
 0x1dc   :  { %531 = vrsqrt.f32 %v447_v45 }
 0x1e9   :  { %v532_v48 = vpop.eup %531 }
 0x1ea   :  { %v449_v49 = vmul.f32 %v532_v48, %v446_v47 }
 0x1ec   :  { %458 = vperm.xlu1 %529, %v449_v49   ;;  %v450_v50 = vmul.f32 %v449_v49, %v438_v39 }
 0x1ee   :  { %452 = vrot.lane.b32.xlu0 %v450_v50, %s541_s8 }
 0x260   :  { %v453_v51 = vpop.permute.xlu0 %452 }
 0x261   :  { %v455_v52 = vsub.f32 %v446_v47, %v453_v51 }
 0x263   :  { %464 = vperm.xlu0 %530, %v455_v52  }
 0x267   :  { %v459_v53 = vpop.permute.xlu1 %458 }
 0x268   :  { %v461_v54 = vmul.f32 %v459_v53, %v427_v33 }
 0x2de   :  { %v465_v55 = vpop.permute.xlu0 %464 }
 0x2df   :  { %v467_v56 = vadd.f32 %v465_v55, %v461_v54 }
 0x2e1   :  { %v468_v57 = vmul.f32 0.01, %v467_v56 }
 0x2e3   :  { %v469_v58 = vmax.f32 %v467_v56, %v468_v57 }
 0x2e5   :  { %470 = vst [vmem:[%s611_s4] sm:$0xff] %v469_v58 }

</bundles_post_ra>
